<compile_context>
chip_gen: v7x
topology: tpu7x:2x2x1
jax: 0.10.0
libtpu: 0.0.40
codegen_flags: <defaults>
</compile_context>

<pallas_src>
import math
from functools import partial

import jax
import jax.numpy as jnp
from jax import lax
from jax.experimental import pallas as pl
from jax.experimental.pallas import tpu as pltpu

_MIB = 1024 * 1024


# ---------------------------------------------------------------------------
# helpers
# ---------------------------------------------------------------------------
def _pick_tile(n, target, align):
    """Largest tile <= target that divides n and is a multiple of `align`.
    Falls back to the full dimension (always a legal block)."""
    if n <= target:
        return n
    t = (target // align) * align
    while t >= align:
        if n % t == 0:
            return t
        t -= align
    return n


def _vmem_limit(nbytes):
    """Explicit scoped-VMEM budget: estimated need + headroom, capped so the
    request is legal on every TPU generation (v7x has only 64 MiB VMEM)."""
    return int(min(max(2 * nbytes + 4 * _MIB, 16 * _MIB), 64 * _MIB))


# ---------------------------------------------------------------------------
# Kernel 1: fused MHA (QKV proj + attention + out proj) + residual + LayerNorm
# ---------------------------------------------------------------------------
def _mha_ln_kernel(xq_ref, xkv_ref,
                   wq_ref, bq_ref, wkv_ref, bkv_ref,
                   wo_ref, bo_ref, g_ref, bt_ref,
                   o_ref,
                   k_ref, v_ref, ctx_ref,
                   *, n_heads, causal, scale, eps, q_tile):
    tq = xq_ref.shape[1]
    d_model = xq_ref.shape[2]
    skv = xkv_ref.shape[1]
    dh = d_model // n_heads

    # ---- K/V projection: once per batch element (q-tile axis is the inner
    #      "arbitrary" grid axis).  One packed (Skv,D)@(D,2D) bf16 matmul;
    #      result stored head-major in a persistent bf16 VMEM scratch and
    #      reused by every q-tile of this batch element.
    @pl.when(pl.program_id(1) == 0)
    def _():
        kv = jnp.dot(xkv_ref[0], wkv_ref[...],
                     preferred_element_type=jnp.float32) + bkv_ref[...]
        kv = kv.astype(jnp.bfloat16)
        for h in range(n_heads):
            lo = h * dh
            k_ref[h] = kv[:, lo:lo + dh]
            v_ref[h] = kv[:, d_model + lo:d_model + lo + dh]

    xq = xq_ref[0]                                   # (tq, D) f32 — residual
    # ---- Q projection: one (tq,D)@(D,D); fold 1/sqrt(dh) into q once
    #      (saves H*tq*skv VPU multiplies on the score matrices).
    q = jnp.dot(xq.astype(jnp.bfloat16), wq_ref[...],
                preferred_element_type=jnp.float32) + bq_ref[...]
    q_bf = (q * scale).astype(jnp.bfloat16)
    qh = jnp.stack([q_bf[:, h * dh:(h + 1) * dh] for h in range(n_heads)],
                   axis=0)                           # (H, tq, dh) head-major

    # ---- head-batched attention (single batched dot_general per stage,
    #      no unrolled per-head live ranges).
    s = jnp.einsum('hqd,hkd->hqk', qh, k_ref[...],
                   preferred_element_type=jnp.float32)       # (H, tq, skv)

    if causal:
        # NOTE: additive -1e9 mask assumes the diagonal is always unmasked
        # (true for causal self-attention); a padding mask would need a
        # where-based formulation.
        q_off = pl.program_id(1) * q_tile
        row = q_off + lax.broadcasted_iota(jnp.int32, (tq, skv), 0)
        col = lax.broadcasted_iota(jnp.int32, (tq, skv), 1)
        s = s + jnp.where(col <= row, 0.0, -1e9).astype(jnp.float32)[None]

    m = jnp.max(s, axis=-1, keepdims=True)                   # f32 softmax
    p = jnp.exp(s - m)
    p = p / jnp.sum(p, axis=-1, keepdims=True)               # exact divide

    ctx = jnp.einsum('hqk,hkd->hqd', p.astype(jnp.bfloat16), v_ref[...],
                     preferred_element_type=jnp.float32)     # (H, tq, dh)
    for h in range(n_heads):
        lo = h * dh
        ctx_ref[:, lo:lo + dh] = ctx[h].astype(jnp.bfloat16)

    # ---- single full-width (K=D) output projection on concatenated heads
    attn = jnp.dot(ctx_ref[...], wo_ref[...],
                   preferred_element_type=jnp.float32) + bo_ref[...]

    # ---- fused residual add + LayerNorm epilogue (f32)
    z = xq + attn
    mu = jnp.mean(z, axis=-1, keepdims=True)
    var = jnp.mean((z - mu) ** 2, axis=-1, keepdims=True)
    o_ref[0] = ((z - mu) * lax.rsqrt(var + eps)) * g_ref[...] + bt_ref[...]


def mha_add_layernorm(x_q, x_kv, attn_params, ln_params, n_heads, causal, eps=1e-5):
    wq, bq, wk, bk, wv, bv, wo, bo = attn_params
    gamma, beta = ln_params
    B, Sq, D = x_q.shape
    Skv = x_kv.shape[1]
    assert D % n_heads == 0, "d_model must be divisible by n_heads"
    dh = D // n_heads
    tq = _pick_tile(Sq, 256, 8)
    assert Sq % tq == 0

    row = lambda a: a.reshape(1, -1).astype(jnp.float32)
    # packed K|V weights -> one (D, 2D) matmul in-kernel
    wkv = jnp.concatenate([wk, wv], axis=1).astype(jnp.bfloat16)
    bkv = jnp.concatenate([bk, bv]).reshape(1, -1).astype(jnp.float32)

    kernel = partial(_mha_ln_kernel, n_heads=n_heads, causal=causal,
                     scale=1.0 / math.sqrt(dh), eps=eps, q_tile=tq)

    # resident (block index never changes) weight / vector specs
    wq_spec = pl.BlockSpec((D, D), lambda b, i: (0, 0))
    wkv_spec = pl.BlockSpec((D, 2 * D), lambda b, i: (0, 0))
    vD = pl.BlockSpec((1, D), lambda b, i: (0, 0))
    v2D = pl.BlockSpec((1, 2 * D), lambda b, i: (0, 0))

    lane = lambda n: max(n, 128)  # lane padding for the VMEM estimate
    nbytes = (2 * tq * D * 4                 # x_q block (f32, double-buffered)
              + 2 * Skv * D * 2              # x_kv block (bf16)
              + 2 * tq * D * 4               # output block
              + 2 * (2 * D * D * 2 + D * 2 * D * 2)   # resident bf16 weights
              + 2 * 6 * lane(D) * 4          # bias / LN vectors
              + 2 * n_heads * Skv * lane(dh) * 2      # K,V head scratch
              + tq * lane(D) * 2)            # ctx scratch

    return pl.pallas_call(
        kernel,
        out_shape=jax.ShapeDtypeStruct((B, Sq, D), jnp.float32),
        grid=(B, Sq // tq),
        in_specs=[
            pl.BlockSpec((1, tq, D), lambda b, i: (b, i, 0)),    # x_q / residual (f32)
            pl.BlockSpec((1, Skv, D), lambda b, i: (b, 0, 0)),   # x_kv (bf16, per-batch)
            wq_spec, vD,      # Wq, bq
            wkv_spec, v2D,    # [Wk|Wv], [bk|bv]
            wq_spec, vD,      # Wo, bo
            vD, vD,           # gamma, beta
        ],
        out_specs=pl.BlockSpec((1, tq, D), lambda b, i: (b, i, 0)),
        scratch_shapes=[pltpu.VMEM((n_heads, Skv, dh), jnp.bfloat16),  # K (head-major)
                        pltpu.VMEM((n_heads, Skv, dh), jnp.bfloat16),  # V (head-major)
                        pltpu.VMEM((tq, D), jnp.bfloat16)],            # concat'd ctx
        compiler_params=pltpu.CompilerParams(
            dimension_semantics=("parallel", "arbitrary"),
            vmem_limit_bytes=_vmem_limit(nbytes)),
    )(x_q, x_kv.astype(jnp.bfloat16),
      wq.astype(jnp.bfloat16), row(bq),
      wkv, bkv,
      wo.astype(jnp.bfloat16), row(bo),
      row(gamma), row(beta))


# ---------------------------------------------------------------------------
# Kernel 2: FFN (Linear -> ReLU -> Linear), F-tiled, + residual + LayerNorm
# ---------------------------------------------------------------------------
def _ffn_ln_kernel(x_ref, w1_ref, b1_ref, w2_ref, b2_ref, g_ref, bt_ref,
                   o_ref, acc_ref, xbf_ref, *, eps):
    f = pl.program_id(2)

    @pl.when(f == 0)
    def _():
        acc_ref[...] = jnp.zeros_like(acc_ref)
        # hoisted bf16 cast of the input tile, reused by every F-tile step
        xbf_ref[...] = x_ref[0].astype(jnp.bfloat16)

    h = jnp.dot(xbf_ref[...], w1_ref[...],
                preferred_element_type=jnp.float32) + b1_ref[...]
    h = jnp.maximum(h, 0.0)
    acc_ref[...] += jnp.dot(h.astype(jnp.bfloat16), w2_ref[...],
                            preferred_element_type=jnp.float32)

    @pl.when(f == pl.num_programs(2) - 1)
    def _():
        z = x_ref[0] + acc_ref[...] + b2_ref[...]
        mu = jnp.mean(z, axis=-1, keepdims=True)
        var = jnp.mean((z - mu) ** 2, axis=-1, keepdims=True)
        o_ref[0] = ((z - mu) * lax.rsqrt(var + eps)) * g_ref[...] + bt_ref[...]


def ffn_add_layernorm(x, ffn_params, ln_params, eps=1e-5):
    w1, b1, w2, b2 = ffn_params
    gamma, beta = ln_params
    B, S, D = x.shape
    F = w1.shape[1]
    tm = _pick_tile(S, 256, 8)
    tf = _pick_tile(F, 512, 128)
    assert S % tm == 0 and F % tf == 0

    row = lambda a: a.reshape(1, -1).astype(jnp.float32)

    nbytes = (2 * tm * D * 4                 # x block
              + 2 * (D * tf * 2 + tf * D * 2)  # W1/W2 tiles (bf16, double-buffered)
              + 2 * tm * D * 4               # output block
              + 2 * (tf + 3 * D) * 4         # bias / LN vectors
              + tm * D * 4 + tm * D * 2)     # acc + bf16 x scratch

    return pl.pallas_call(
        partial(_ffn_ln_kernel, eps=eps),
        out_shape=jax.ShapeDtypeStruct((B, S, D), jnp.float32),
        grid=(B, S // tm, F // tf),
        in_specs=[
            pl.BlockSpec((1, tm, D), lambda b, i, f: (b, i, 0)),  # x / residual
            pl.BlockSpec((D, tf), lambda b, i, f: (0, f)),        # W1 tile
            pl.BlockSpec((1, tf), lambda b, i, f: (0, f)),        # b1 tile
            pl.BlockSpec((tf, D), lambda b, i, f: (f, 0)),        # W2 tile
            pl.BlockSpec((1, D), lambda b, i, f: (0, 0)),         # b2
            pl.BlockSpec((1, D), lambda b, i, f: (0, 0)),         # gamma
            pl.BlockSpec((1, D), lambda b, i, f: (0, 0)),         # beta
        ],
        out_specs=pl.BlockSpec((1, tm, D), lambda b, i, f: (b, i, 0)),
        scratch_shapes=[pltpu.VMEM((tm, D), jnp.float32),          # f32 accumulator
                        pltpu.VMEM((tm, D), jnp.bfloat16)],        # hoisted bf16 x
        compiler_params=pltpu.CompilerParams(
            dimension_semantics=("parallel", "parallel", "arbitrary"),
            vmem_limit_bytes=_vmem_limit(nbytes)),
    )(x, w1.astype(jnp.bfloat16), row(b1), w2.astype(jnp.bfloat16), row(b2),
      row(gamma), row(beta))


# ---------------------------------------------------------------------------
# DecoderLayer forward (composition of the fused kernels)
# ---------------------------------------------------------------------------
def decoder_layer(x, encoder_output, params, n_heads):
    # Self-attention (causal tgt_mask) -> Add & Norm   (fused)
    x = mha_add_layernorm(x, x, params["self_attn"], params["norm1"],
                          n_heads, causal=True)
    # Cross-attention (src_mask=None) -> Add & Norm    (fused)
    x = mha_add_layernorm(x, encoder_output, params["cross_attn"], params["norm2"],
                          n_heads, causal=False)
    # Feed-forward -> Add & Norm                        (fused)
    x = ffn_add_layernorm(x, params["ffn"], params["norm3"])
    return x


# ---------------------------------------------------------------------------
# Pure-JAX reference (f32) for the correctness check
# ---------------------------------------------------------------------------
def _ref_mha(x_q, x_kv, params, n_heads, causal):
    wq, bq, wk, bk, wv, bv, wo, bo = params
    B, Sq, D = x_q.shape
    Skv = x_kv.shape[1]
    Dh = D // n_heads
    q = (x_q @ wq + bq).reshape(B, Sq, n_heads, Dh).transpose(0, 2, 1, 3)
    k = (x_kv @ wk + bk).reshape(B, Skv, n_heads, Dh).transpose(0, 2, 1, 3)
    v = (x_kv @ wv + bv).reshape(B, Skv, n_heads, Dh).transpose(0, 2, 1, 3)
    scores = jnp.einsum("bhqd,bhkd->bhqk", q, k) / math.sqrt(Dh)
    if causal:
        row = jnp.arange(Sq)[:, None]
        col = jnp.arange(Skv)[None, :]
        scores = jnp.where(col <= row, scores, -1e9)
    p = jax.nn.softmax(scores, axis=-1)
    ctx = jnp.einsum("bhqk,bhkd->bhqd", p, v).transpose(0, 2, 1, 3).reshape(B, Sq, D)
    return ctx @ wo + bo


def _ref_ln(z, gamma, beta, eps=1e-5):
    mu = jnp.mean(z, axis=-1, keepdims=True)
    var = jnp.mean((z - mu) ** 2, axis=-1, keepdims=True)
    return (z - mu) / jnp.sqrt(var + eps) * gamma + beta


def _ref_decoder_layer(x, enc, params, n_heads):
    x = _ref_ln(x + _ref_mha(x, x, params["self_attn"], n_heads, True), *params["norm1"])
    x = _ref_ln(x + _ref_mha(x, enc, params["cross_attn"], n_heads, False), *params["norm2"])
    w1, b1, w2, b2 = params["ffn"]
    ff = jnp.maximum(x @ w1 + b1, 0.0) @ w2 + b2
    x = _ref_ln(x + ff, *params["norm3"])
    return x


# ---------------------------------------------------------------------------
# Deterministic parameter init + driver
# ---------------------------------------------------------------------------
def _init_params(key, d_model, n_heads, d_ff):
    ks = jax.random.split(key, 16)

    def lin(k, din, dout, i):
        w = 0.02 * jax.random.normal(ks[i], (din, dout), jnp.float32)
        b = 0.01 * jax.random.normal(jax.random.fold_in(k, i), (dout,), jnp.float32)
        return w, b

    def mha(offset):
        wq, bq = lin(key, d_model, d_model, offset + 0)
        wk, bk = lin(key, d_model, d_model, offset + 1)
        wv, bv = lin(key, d_model, d_model, offset + 2)
        wo, bo = lin(key, d_model, d_model, offset + 3)
        return (wq, bq, wk, bk, wv, bv, wo, bo)

    w1, b1 = lin(key, d_model, d_ff, 8)
    w2, b2 = lin(key, d_ff, d_model, 9)
    ln = lambda i: (jnp.ones((d_model,), jnp.float32)
                    + 0.05 * jax.random.normal(ks[10 + i], (d_model,)),
                    0.05 * jax.random.normal(ks[13 + i % 3], (d_model,)))
    return {
        "self_attn": mha(0),
        "cross_attn": mha(4),
        "ffn": (w1, b1, w2, b2),
        "norm1": ln(0),
        "norm2": ln(1),
        "norm3": ln(2),
    }


if __name__ == "__main__":
    B, S_TGT, S_SRC = 2, 8, 8
    D_MODEL, N_HEADS, D_FF = 32, 4, 64

    key = jax.random.PRNGKey(0)
    kx, kenc, kp = jax.random.split(key, 3)
    x = jax.random.normal(kx, (B, S_TGT, D_MODEL), jnp.float32)
    enc_out = jax.random.normal(kenc, (B, S_SRC, D_MODEL), jnp.float32)
    params = _init_params(kp, D_MODEL, N_HEADS, D_FF)

    out = decoder_layer(x, enc_out, params, N_HEADS)
    out = jax.block_until_ready(out)

    ref = jax.block_until_ready(_ref_decoder_layer(x, enc_out, params, N_HEADS))
    assert out.shape == (B, S_TGT, D_MODEL)
    assert jnp.all(jnp.isfinite(out))
    # bf16 MXU inputs vs f32 reference -> slightly loosened tolerance
    assert jnp.allclose(out, ref, atol=3e-2, rtol=3e-2), "mismatch vs JAX reference"

    print("KERNEL_OK")
</pallas_src>

<mosaic_0001>
module attributes {stable_mosaic.version = 11 : i64} {
  func.func @_mha_ln_kernel(%arg0: i32, %arg1: i32, %arg2: memref<1x8x32xf32, #tpu.memory_space<vmem>>, %arg3: memref<1x8x32xbf16, #tpu.memory_space<vmem>>, %arg4: memref<32x32xbf16, #tpu.memory_space<vmem>>, %arg5: memref<1x32xf32, #tpu.memory_space<vmem>>, %arg6: memref<32x64xbf16, #tpu.memory_space<vmem>>, %arg7: memref<1x64xf32, #tpu.memory_space<vmem>>, %arg8: memref<32x32xbf16, #tpu.memory_space<vmem>>, %arg9: memref<1x32xf32, #tpu.memory_space<vmem>>, %arg10: memref<1x32xf32, #tpu.memory_space<vmem>>, %arg11: memref<1x32xf32, #tpu.memory_space<vmem>>, %arg12: memref<1x8x32xf32, #tpu.memory_space<vmem>>, %arg13: memref<4x8x8xbf16, #tpu.memory_space<vmem>>, %arg14: memref<4x8x8xbf16, #tpu.memory_space<vmem>>, %arg15: memref<8x32xbf16, #tpu.memory_space<vmem>>) attributes {dimension_semantics = [#tpu.dimension_semantics<parallel>, #tpu.dimension_semantics<arbitrary>], iteration_bounds = array<i64: 2, 1>, scalar_prefetch = 0 : i64, scratch_operands = 3 : i64, tpu.core_type = #tpu.core_type<tc>, window_params = [{transform_indices = @transform_0, window_bounds = array<i64: 1, 8, 32>}, {transform_indices = @transform_1, window_bounds = array<i64: 1, 8, 32>}, {pipeline_mode = #tpu.pipeline_mode<synchronous>, transform_indices = @transform_2, window_bounds = array<i64: 32, 32>}, {pipeline_mode = #tpu.pipeline_mode<synchronous>, transform_indices = @transform_3, window_bounds = array<i64: 1, 32>}, {pipeline_mode = #tpu.pipeline_mode<synchronous>, transform_indices = @transform_4, window_bounds = array<i64: 32, 64>}, {pipeline_mode = #tpu.pipeline_mode<synchronous>, transform_indices = @transform_5, window_bounds = array<i64: 1, 64>}, {pipeline_mode = #tpu.pipeline_mode<synchronous>, transform_indices = @transform_6, window_bounds = array<i64: 32, 32>}, {pipeline_mode = #tpu.pipeline_mode<synchronous>, transform_indices = @transform_7, window_bounds = array<i64: 1, 32>}, {pipeline_mode = #tpu.pipeline_mode<synchronous>, transform_indices = @transform_8, window_bounds = array<i64: 1, 32>}, {pipeline_mode = #tpu.pipeline_mode<synchronous>, transform_indices = @transform_9, window_bounds = array<i64: 1, 32>}, {transform_indices = @transform_10, window_bounds = array<i64: 1, 8, 32>}]} {
    %c0_i32 = arith.constant 0 : i32
    %0 = arith.cmpi eq, %arg1, %c0_i32 : i32
    %1 = arith.extui %0 : i1 to i32
    %c0_i32_0 = arith.constant 0 : i32
    %2 = arith.cmpi ne, %1, %c0_i32_0 : i32
    scf.if %2 {
      %c0_44 = arith.constant 0 : index
      %c0_45 = arith.constant 0 : index
      %c0_46 = arith.constant 0 : index
      %99 = vector.load %arg3[%c0_44, %c0_45, %c0_46] : memref<1x8x32xbf16, #tpu.memory_space<vmem>>, vector<1x8x32xbf16>
      %100 = vector.shape_cast %99 : vector<1x8x32xbf16> to vector<8x32xbf16>
      %c0_47 = arith.constant 0 : index
      %c0_48 = arith.constant 0 : index
      %101 = vector.load %arg6[%c0_47, %c0_48] : memref<32x64xbf16, #tpu.memory_space<vmem>>, vector<32x64xbf16>
      %cst_49 = arith.constant dense<0.000000e+00> : vector<8x64xf32>
      %102 = tpu.matmul %100, %101, %cst_49 {dimension_numbers = #tpu.dot_dimension_numbers<[1], [0], [0], [1], [0, 0, 1, 1], [], []>} : vector<8x32xbf16>, vector<32x64xbf16>, vector<8x64xf32> -> vector<8x64xf32>
      %c0_50 = arith.constant 0 : index
      %c0_51 = arith.constant 0 : index
      %103 = vector.load %arg7[%c0_50, %c0_51] : memref<1x64xf32, #tpu.memory_space<vmem>>, vector<1x64xf32>
      %104 = vector.broadcast %103 : vector<1x64xf32> to vector<8x64xf32>
      %105 = arith.addf %102, %104 : vector<8x64xf32>
      %106 = arith.truncf %105 : vector<8x64xf32> to vector<8x64xbf16>
      %107 = vector.extract_strided_slice %106 {offsets = [0, 0], sizes = [8, 8], strides = [1, 1]} : vector<8x64xbf16> to vector<8x8xbf16>
      %c0_52 = arith.constant 0 : index
      %c0_53 = arith.constant 0 : index
      %c0_54 = arith.constant 0 : index
      %108 = vector.load %arg13[%c0_52, %c0_53, %c0_54] : memref<4x8x8xbf16, #tpu.memory_space<vmem>>, vector<1x8x8xbf16>
      %109 = vector.shape_cast %108 : vector<1x8x8xbf16> to vector<8x8xbf16>
      %110 = vector.shape_cast %107 : vector<8x8xbf16> to vector<1x8x8xbf16>
      tpu.vector_store %arg13[%c0_52, %c0_53, %c0_54], %110 {strides = array<i32>} : memref<4x8x8xbf16, #tpu.memory_space<vmem>>, vector<1x8x8xbf16>,
      %111 = vector.extract_strided_slice %106 {offsets = [0, 32], sizes = [8, 8], strides = [1, 1]} : vector<8x64xbf16> to vector<8x8xbf16>
      %c0_55 = arith.constant 0 : index
      %c0_56 = arith.constant 0 : index
      %c0_57 = arith.constant 0 : index
      %112 = vector.load %arg14[%c0_55, %c0_56, %c0_57] : memref<4x8x8xbf16, #tpu.memory_space<vmem>>, vector<1x8x8xbf16>
      %113 = vector.shape_cast %112 : vector<1x8x8xbf16> to vector<8x8xbf16>
      %114 = vector.shape_cast %111 : vector<8x8xbf16> to vector<1x8x8xbf16>
      tpu.vector_store %arg14[%c0_55, %c0_56, %c0_57], %114 {strides = array<i32>} : memref<4x8x8xbf16, #tpu.memory_space<vmem>>, vector<1x8x8xbf16>,
      %115 = vector.extract_strided_slice %106 {offsets = [0, 8], sizes = [8, 8], strides = [1, 1]} : vector<8x64xbf16> to vector<8x8xbf16>
      %c1 = arith.constant 1 : index
      %c0_58 = arith.constant 0 : index
      %c0_59 = arith.constant 0 : index
      %116 = vector.load %arg13[%c1, %c0_58, %c0_59] : memref<4x8x8xbf16, #tpu.memory_space<vmem>>, vector<1x8x8xbf16>
      %117 = vector.shape_cast %116 : vector<1x8x8xbf16> to vector<8x8xbf16>
      %118 = vector.shape_cast %115 : vector<8x8xbf16> to vector<1x8x8xbf16>
      tpu.vector_store %arg13[%c1, %c0_58, %c0_59], %118 {strides = array<i32>} : memref<4x8x8xbf16, #tpu.memory_space<vmem>>, vector<1x8x8xbf16>,
      %119 = vector.extract_strided_slice %106 {offsets = [0, 40], sizes = [8, 8], strides = [1, 1]} : vector<8x64xbf16> to vector<8x8xbf16>
      %c1_60 = arith.constant 1 : index
      %c0_61 = arith.constant 0 : index
      %c0_62 = arith.constant 0 : index
      %120 = vector.load %arg14[%c1_60, %c0_61, %c0_62] : memref<4x8x8xbf16, #tpu.memory_space<vmem>>, vector<1x8x8xbf16>
      %121 = vector.shape_cast %120 : vector<1x8x8xbf16> to vector<8x8xbf16>
      %122 = vector.shape_cast %119 : vector<8x8xbf16> to vector<1x8x8xbf16>
      tpu.vector_store %arg14[%c1_60, %c0_61, %c0_62], %122 {strides = array<i32>} : memref<4x8x8xbf16, #tpu.memory_space<vmem>>, vector<1x8x8xbf16>,
      %123 = vector.extract_strided_slice %106 {offsets = [0, 16], sizes = [8, 8], strides = [1, 1]} : vector<8x64xbf16> to vector<8x8xbf16>
      %c2 = arith.constant 2 : index
      %c0_63 = arith.constant 0 : index
      %c0_64 = arith.constant 0 : index
      %124 = vector.load %arg13[%c2, %c0_63, %c0_64] : memref<4x8x8xbf16, #tpu.memory_space<vmem>>, vector<1x8x8xbf16>
      %125 = vector.shape_cast %124 : vector<1x8x8xbf16> to vector<8x8xbf16>
      %126 = vector.shape_cast %123 : vector<8x8xbf16> to vector<1x8x8xbf16>
      tpu.vector_store %arg13[%c2, %c0_63, %c0_64], %126 {strides = array<i32>} : memref<4x8x8xbf16, #tpu.memory_space<vmem>>, vector<1x8x8xbf16>,
      %127 = vector.extract_strided_slice %106 {offsets = [0, 48], sizes = [8, 8], strides = [1, 1]} : vector<8x64xbf16> to vector<8x8xbf16>
      %c2_65 = arith.constant 2 : index
      %c0_66 = arith.constant 0 : index
      %c0_67 = arith.constant 0 : index
      %128 = vector.load %arg14[%c2_65, %c0_66, %c0_67] : memref<4x8x8xbf16, #tpu.memory_space<vmem>>, vector<1x8x8xbf16>
      %129 = vector.shape_cast %128 : vector<1x8x8xbf16> to vector<8x8xbf16>
      %130 = vector.shape_cast %127 : vector<8x8xbf16> to vector<1x8x8xbf16>
      tpu.vector_store %arg14[%c2_65, %c0_66, %c0_67], %130 {strides = array<i32>} : memref<4x8x8xbf16, #tpu.memory_space<vmem>>, vector<1x8x8xbf16>,
      %131 = vector.extract_strided_slice %106 {offsets = [0, 24], sizes = [8, 8], strides = [1, 1]} : vector<8x64xbf16> to vector<8x8xbf16>
      %c3 = arith.constant 3 : index
      %c0_68 = arith.constant 0 : index
      %c0_69 = arith.constant 0 : index
      %132 = vector.load %arg13[%c3, %c0_68, %c0_69] : memref<4x8x8xbf16, #tpu.memory_space<vmem>>, vector<1x8x8xbf16>
      %133 = vector.shape_cast %132 : vector<1x8x8xbf16> to vector<8x8xbf16>
      %134 = vector.shape_cast %131 : vector<8x8xbf16> to vector<1x8x8xbf16>
      tpu.vector_store %arg13[%c3, %c0_68, %c0_69], %134 {strides = array<i32>} : memref<4x8x8xbf16, #tpu.memory_space<vmem>>, vector<1x8x8xbf16>,
      %135 = vector.extract_strided_slice %106 {offsets = [0, 56], sizes = [8, 8], strides = [1, 1]} : vector<8x64xbf16> to vector<8x8xbf16>
      %c3_70 = arith.constant 3 : index
      %c0_71 = arith.constant 0 : index
      %c0_72 = arith.constant 0 : index
      %136 = vector.load %arg14[%c3_70, %c0_71, %c0_72] : memref<4x8x8xbf16, #tpu.memory_space<vmem>>, vector<1x8x8xbf16>
      %137 = vector.shape_cast %136 : vector<1x8x8xbf16> to vector<8x8xbf16>
      %138 = vector.shape_cast %135 : vector<8x8xbf16> to vector<1x8x8xbf16>
      tpu.vector_store %arg14[%c3_70, %c0_71, %c0_72], %138 {strides = array<i32>} : memref<4x8x8xbf16, #tpu.memory_space<vmem>>, vector<1x8x8xbf16>,
    } else {
    }
    %c0 = arith.constant 0 : index
    %c0_1 = arith.constant 0 : index
    %c0_2 = arith.constant 0 : index
    %3 = vector.load %arg2[%c0, %c0_1, %c0_2] : memref<1x8x32xf32, #tpu.memory_space<vmem>>, vector<1x8x32xf32>
    %4 = vector.shape_cast %3 : vector<1x8x32xf32> to vector<8x32xf32>
    %5 = arith.truncf %4 : vector<8x32xf32> to vector<8x32xbf16>
    %c0_3 = arith.constant 0 : index
    %c0_4 = arith.constant 0 : index
    %6 = vector.load %arg4[%c0_3, %c0_4] : memref<32x32xbf16, #tpu.memory_space<vmem>>, vector<32x32xbf16>
    %cst = arith.constant dense<0.000000e+00> : vector<8x32xf32>
    %7 = tpu.matmul %5, %6, %cst {dimension_numbers = #tpu.dot_dimension_numbers<[1], [0], [0], [1], [0, 0, 1, 1], [], []>} : vector<8x32xbf16>, vector<32x32xbf16>, vector<8x32xf32> -> vector<8x32xf32>
    %c0_5 = arith.constant 0 : index
    %c0_6 = arith.constant 0 : index
    %8 = vector.load %arg5[%c0_5, %c0_6] : memref<1x32xf32, #tpu.memory_space<vmem>>, vector<1x32xf32>
    %9 = vector.broadcast %8 : vector<1x32xf32> to vector<8x32xf32>
    %10 = arith.addf %7, %9 : vector<8x32xf32>
    %cst_7 = arith.constant 0.353553385 : f32
    %11 = vector.broadcast %cst_7 : f32 to vector<8x32xf32>
    %12 = arith.mulf %10, %11 : vector<8x32xf32>
    %13 = arith.truncf %12 : vector<8x32xf32> to vector<8x32xbf16>
    %14 = vector.extract_strided_slice %13 {offsets = [0, 0], sizes = [8, 8], strides = [1, 1]} : vector<8x32xbf16> to vector<8x8xbf16>
    %15 = vector.extract_strided_slice %13 {offsets = [0, 8], sizes = [8, 8], strides = [1, 1]} : vector<8x32xbf16> to vector<8x8xbf16>
    %16 = vector.extract_strided_slice %13 {offsets = [0, 16], sizes = [8, 8], strides = [1, 1]} : vector<8x32xbf16> to vector<8x8xbf16>
    %17 = vector.extract_strided_slice %13 {offsets = [0, 24], sizes = [8, 8], strides = [1, 1]} : vector<8x32xbf16> to vector<8x8xbf16>
    %18 = vector.shape_cast %14 : vector<8x8xbf16> to vector<1x8x8xbf16>
    %19 = vector.shape_cast %15 : vector<8x8xbf16> to vector<1x8x8xbf16>
    %20 = vector.shape_cast %16 : vector<8x8xbf16> to vector<1x8x8xbf16>
    %21 = vector.shape_cast %17 : vector<8x8xbf16> to vector<1x8x8xbf16>
    %22 = tpu.concatenate %18, %19, %20, %21 in 0 : vector<1x8x8xbf16>, vector<1x8x8xbf16>, vector<1x8x8xbf16>, vector<1x8x8xbf16> -> vector<4x8x8xbf16>
    %c0_8 = arith.constant 0 : index
    %c0_9 = arith.constant 0 : index
    %c0_10 = arith.constant 0 : index
    %23 = vector.load %arg13[%c0_8, %c0_9, %c0_10] : memref<4x8x8xbf16, #tpu.memory_space<vmem>>, vector<4x8x8xbf16>
    "tpu.trace_start"() <{level = 10 : i32, message = "hqd,hkd->hqk"}> : () -> ()
    %cst_11 = arith.constant dense<0.000000e+00> : vector<4x8x8xf32>
    %24 = tpu.matmul %22, %23, %cst_11 {dimension_numbers = #tpu.dot_dimension_numbers<[2], [2], [1], [1], [0, 0, 0, 1, 1, 1], [0], [0]>} : vector<4x8x8xbf16>, vector<4x8x8xbf16>, vector<4x8x8xf32> -> vector<4x8x8xf32>
    "tpu.trace_stop"() : () -> ()
    %c8_i32 = arith.constant 8 : i32
    %25 = arith.muli %arg1, %c8_i32 : i32
    %26 = tpu.iota {dimensions = array<i32: 0>} : vector<8x8xi32>
    %27 = vector.broadcast %25 : i32 to vector<8x8xi32>
    %28 = arith.addi %27, %26 : vector<8x8xi32>
    %29 = tpu.iota {dimensions = array<i32: 1>} : vector<8x8xi32>
    %30 = arith.cmpi sle, %29, %28 : vector<8x8xi32>
    %cst_12 = arith.constant 0.000000e+00 : f32
    %cst_13 = arith.constant -1.000000e+09 : f32
    %31 = vector.broadcast %cst_12 : f32 to vector<8x8xf32>
    %32 = vector.broadcast %cst_13 : f32 to vector<8x8xf32>
    %33 = arith.select %30, %31, %32 : vector<8x8xi1>, vector<8x8xf32>
    %34 = vector.shape_cast %33 : vector<8x8xf32> to vector<1x8x8xf32>
    %35 = vector.broadcast %34 : vector<1x8x8xf32> to vector<4x8x8xf32>
    %36 = arith.addf %24, %35 : vector<4x8x8xf32>
    %cst_14 = arith.constant dense<0xFF800000> : vector<4x8xf32>
    %37 = vector.multi_reduction <maximumf>, %36, %cst_14 [2] : vector<4x8x8xf32> to vector<4x8xf32>
    %38 = vector.shape_cast %37 : vector<4x8xf32> to vector<4x8x1xf32>
    %39 = vector.broadcast %38 : vector<4x8x1xf32> to vector<4x8x8xf32>
    %40 = arith.subf %36, %39 : vector<4x8x8xf32>
    %41 = math.exp %40 : vector<4x8x8xf32>
    %cst_15 = arith.constant dense<0.000000e+00> : vector<4x8xf32>
    %42 = vector.multi_reduction <add>, %41, %cst_15 [2] : vector<4x8x8xf32> to vector<4x8xf32>
    %43 = vector.shape_cast %42 : vector<4x8xf32> to vector<4x8x1xf32>
    %44 = vector.broadcast %43 : vector<4x8x1xf32> to vector<4x8x8xf32>
    %45 = arith.divf %41, %44 : vector<4x8x8xf32>
    %46 = arith.truncf %45 : vector<4x8x8xf32> to vector<4x8x8xbf16>
    %c0_16 = arith.constant 0 : index
    %c0_17 = arith.constant 0 : index
    %c0_18 = arith.constant 0 : index
    %47 = vector.load %arg14[%c0_16, %c0_17, %c0_18] : memref<4x8x8xbf16, #tpu.memory_space<vmem>>, vector<4x8x8xbf16>
    "tpu.trace_start"() <{level = 10 : i32, message = "hqk,hkd->hqd"}> : () -> ()
    %cst_19 = arith.constant dense<0.000000e+00> : vector<4x8x8xf32>
    %48 = tpu.matmul %46, %47, %cst_19 {dimension_numbers = #tpu.dot_dimension_numbers<[2], [1], [1], [2], [0, 0, 0, 1, 1, 2], [0], [0]>} : vector<4x8x8xbf16>, vector<4x8x8xbf16>, vector<4x8x8xf32> -> vector<4x8x8xf32>
    "tpu.trace_stop"() : () -> ()
    %49 = vector.extract_strided_slice %48 {offsets = [0, 0, 0], sizes = [1, 8, 8], strides = [1, 1, 1]} : vector<4x8x8xf32> to vector<1x8x8xf32>
    %50 = vector.shape_cast %49 : vector<1x8x8xf32> to vector<8x8xf32>
    %51 = arith.truncf %50 : vector<8x8xf32> to vector<8x8xbf16>
    %c0_20 = arith.constant 0 : index
    %c0_21 = arith.constant 0 : index
    %52 = vector.load %arg15[%c0_20, %c0_21] : memref<8x32xbf16, #tpu.memory_space<vmem>>, vector<8x8xbf16>
    tpu.vector_store %arg15[%c0_20, %c0_21], %51 {strides = array<i32>} : memref<8x32xbf16, #tpu.memory_space<vmem>>, vector<8x8xbf16>,
    %53 = vector.extract_strided_slice %48 {offsets = [1, 0, 0], sizes = [1, 8, 8], strides = [1, 1, 1]} : vector<4x8x8xf32> to vector<1x8x8xf32>
    %54 = vector.shape_cast %53 : vector<1x8x8xf32> to vector<8x8xf32>
    %55 = arith.truncf %54 : vector<8x8xf32> to vector<8x8xbf16>
    %c0_22 = arith.constant 0 : index
    %c8 = arith.constant 8 : index
    %56 = vector.load %arg15[%c0_22, %c8] : memref<8x32xbf16, #tpu.memory_space<vmem>>, vector<8x8xbf16>
    tpu.vector_store %arg15[%c0_22, %c8], %55 {strides = array<i32>} : memref<8x32xbf16, #tpu.memory_space<vmem>>, vector<8x8xbf16>,
    %57 = vector.extract_strided_slice %48 {offsets = [2, 0, 0], sizes = [1, 8, 8], strides = [1, 1, 1]} : vector<4x8x8xf32> to vector<1x8x8xf32>
    %58 = vector.shape_cast %57 : vector<1x8x8xf32> to vector<8x8xf32>
    %59 = arith.truncf %58 : vector<8x8xf32> to vector<8x8xbf16>
    %c0_23 = arith.constant 0 : index
    %c16 = arith.constant 16 : index
    %60 = vector.load %arg15[%c0_23, %c16] : memref<8x32xbf16, #tpu.memory_space<vmem>>, vector<8x8xbf16>
    tpu.vector_store %arg15[%c0_23, %c16], %59 {strides = array<i32>} : memref<8x32xbf16, #tpu.memory_space<vmem>>, vector<8x8xbf16>,
    %61 = vector.extract_strided_slice %48 {offsets = [3, 0, 0], sizes = [1, 8, 8], strides = [1, 1, 1]} : vector<4x8x8xf32> to vector<1x8x8xf32>
    %62 = vector.shape_cast %61 : vector<1x8x8xf32> to vector<8x8xf32>
    %63 = arith.truncf %62 : vector<8x8xf32> to vector<8x8xbf16>
    %c0_24 = arith.constant 0 : index
    %c24 = arith.constant 24 : index
    %64 = vector.load %arg15[%c0_24, %c24] : memref<8x32xbf16, #tpu.memory_space<vmem>>, vector<8x8xbf16>
    tpu.vector_store %arg15[%c0_24, %c24], %63 {strides = array<i32>} : memref<8x32xbf16, #tpu.memory_space<vmem>>, vector<8x8xbf16>,
    %c0_25 = arith.constant 0 : index
    %c0_26 = arith.constant 0 : index
    %65 = vector.load %arg15[%c0_25, %c0_26] : memref<8x32xbf16, #tpu.memory_space<vmem>>, vector<8x32xbf16>
    %c0_27 = arith.constant 0 : index
    %c0_28 = arith.constant 0 : index
    %66 = vector.load %arg8[%c0_27, %c0_28] : memref<32x32xbf16, #tpu.memory_space<vmem>>, vector<32x32xbf16>
    %cst_29 = arith.constant dense<0.000000e+00> : vector<8x32xf32>
    %67 = tpu.matmul %65, %66, %cst_29 {dimension_numbers = #tpu.dot_dimension_numbers<[1], [0], [0], [1], [0, 0, 1, 1], [], []>} : vector<8x32xbf16>, vector<32x32xbf16>, vector<8x32xf32> -> vector<8x32xf32>
    %c0_30 = arith.constant 0 : index
    %c0_31 = arith.constant 0 : index
    %68 = vector.load %arg9[%c0_30, %c0_31] : memref<1x32xf32, #tpu.memory_space<vmem>>, vector<1x32xf32>
    %69 = vector.broadcast %68 : vector<1x32xf32> to vector<8x32xf32>
    %70 = arith.addf %67, %69 : vector<8x32xf32>
    %71 = arith.addf %4, %70 : vector<8x32xf32>
    %cst_32 = arith.constant dense<0.000000e+00> : vector<8xf32>
    %72 = vector.multi_reduction <add>, %71, %cst_32 [1] : vector<8x32xf32> to vector<8xf32>
    %73 = vector.shape_cast %72 : vector<8xf32> to vector<8x1xf32>
    %cst_33 = arith.constant 3.200000e+01 : f32
    %74 = vector.broadcast %cst_33 : f32 to vector<8x1xf32>
    %75 = arith.divf %73, %74 : vector<8x1xf32>
    %76 = vector.broadcast %75 : vector<8x1xf32> to vector<8x32xf32>
    %77 = arith.subf %71, %76 : vector<8x32xf32>
    %78 = arith.mulf %77, %77 : vector<8x32xf32>
    %cst_34 = arith.constant dense<0.000000e+00> : vector<8xf32>
    %79 = vector.multi_reduction <add>, %78, %cst_34 [1] : vector<8x32xf32> to vector<8xf32>
    %80 = vector.shape_cast %79 : vector<8xf32> to vector<8x1xf32>
    %cst_35 = arith.constant 3.200000e+01 : f32
    %81 = vector.broadcast %cst_35 : f32 to vector<8x1xf32>
    %82 = arith.divf %80, %81 : vector<8x1xf32>
    %83 = vector.broadcast %75 : vector<8x1xf32> to vector<8x32xf32>
    %84 = arith.subf %71, %83 : vector<8x32xf32>
    %cst_36 = arith.constant 9.99999974E-6 : f32
    %85 = vector.broadcast %cst_36 : f32 to vector<8x1xf32>
    %86 = arith.addf %82, %85 : vector<8x1xf32>
    %87 = math.rsqrt %86 : vector<8x1xf32>
    %88 = vector.broadcast %87 : vector<8x1xf32> to vector<8x32xf32>
    %89 = arith.mulf %84, %88 : vector<8x32xf32>
    %c0_37 = arith.constant 0 : index
    %c0_38 = arith.constant 0 : index
    %90 = vector.load %arg10[%c0_37, %c0_38] : memref<1x32xf32, #tpu.memory_space<vmem>>, vector<1x32xf32>
    %91 = vector.broadcast %90 : vector<1x32xf32> to vector<8x32xf32>
    %92 = arith.mulf %89, %91 : vector<8x32xf32>
    %c0_39 = arith.constant 0 : index
    %c0_40 = arith.constant 0 : index
    %93 = vector.load %arg11[%c0_39, %c0_40] : memref<1x32xf32, #tpu.memory_space<vmem>>, vector<1x32xf32>
    %94 = vector.broadcast %93 : vector<1x32xf32> to vector<8x32xf32>
    %95 = arith.addf %92, %94 : vector<8x32xf32>
    %c0_41 = arith.constant 0 : index
    %c0_42 = arith.constant 0 : index
    %c0_43 = arith.constant 0 : index
    %96 = vector.load %arg12[%c0_41, %c0_42, %c0_43] : memref<1x8x32xf32, #tpu.memory_space<vmem>>, vector<1x8x32xf32>
    %97 = vector.shape_cast %96 : vector<1x8x32xf32> to vector<8x32xf32>
    %98 = vector.shape_cast %95 : vector<8x32xf32> to vector<1x8x32xf32>
    tpu.vector_store %arg12[%c0_41, %c0_42, %c0_43], %98 {strides = array<i32>} : memref<1x8x32xf32, #tpu.memory_space<vmem>>, vector<1x8x32xf32>,
    return
  }
  func.func @transform_0(%arg0: i32, %arg1: i32) -> (i32, i32, i32) {
    %c0_i32 = arith.constant 0 : i32
    %c0_i32_0 = arith.constant 0 : i32
    return %arg0, %arg1, %c0_i32 : i32, i32, i32
  }
  func.func @transform_1(%arg0: i32, %arg1: i32) -> (i32, i32, i32) {
    %c0_i32 = arith.constant 0 : i32
    %c0_i32_0 = arith.constant 0 : i32
    %c0_i32_1 = arith.constant 0 : i32
    return %arg0, %c0_i32, %c0_i32_0 : i32, i32, i32
  }
  func.func @transform_2(%arg0: i32, %arg1: i32) -> (i32, i32) {
    %c0_i32 = arith.constant 0 : i32
    %c0_i32_0 = arith.constant 0 : i32
    %c0_i32_1 = arith.constant 0 : i32
    return %c0_i32, %c0_i32_0 : i32, i32
  }
  func.func @transform_3(%arg0: i32, %arg1: i32) -> (i32, i32) {
    %c0_i32 = arith.constant 0 : i32
    %c0_i32_0 = arith.constant 0 : i32
    %c0_i32_1 = arith.constant 0 : i32
    return %c0_i32, %c0_i32_0 : i32, i32
  }
  func.func @transform_4(%arg0: i32, %arg1: i32) -> (i32, i32) {
    %c0_i32 = arith.constant 0 : i32
    %c0_i32_0 = arith.constant 0 : i32
    %c0_i32_1 = arith.constant 0 : i32
    return %c0_i32, %c0_i32_0 : i32, i32
  }
  func.func @transform_5(%arg0: i32, %arg1: i32) -> (i32, i32) {
    %c0_i32 = arith.constant 0 : i32
    %c0_i32_0 = arith.constant 0 : i32
    %c0_i32_1 = arith.constant 0 : i32
    return %c0_i32, %c0_i32_0 : i32, i32
  }
  func.func @transform_6(%arg0: i32, %arg1: i32) -> (i32, i32) {
    %c0_i32 = arith.constant 0 : i32
    %c0_i32_0 = arith.constant 0 : i32
    %c0_i32_1 = arith.constant 0 : i32
    return %c0_i32, %c0_i32_0 : i32, i32
  }
  func.func @transform_7(%arg0: i32, %arg1: i32) -> (i32, i32) {
    %c0_i32 = arith.constant 0 : i32
    %c0_i32_0 = arith.constant 0 : i32
    %c0_i32_1 = arith.constant 0 : i32
    return %c0_i32, %c0_i32_0 : i32, i32
  }
  func.func @transform_8(%arg0: i32, %arg1: i32) -> (i32, i32) {
    %c0_i32 = arith.constant 0 : i32
    %c0_i32_0 = arith.constant 0 : i32
    %c0_i32_1 = arith.constant 0 : i32
    return %c0_i32, %c0_i32_0 : i32, i32
  }
  func.func @transform_9(%arg0: i32, %arg1: i32) -> (i32, i32) {
    %c0_i32 = arith.constant 0 : i32
    %c0_i32_0 = arith.constant 0 : i32
    %c0_i32_1 = arith.constant 0 : i32
    return %c0_i32, %c0_i32_0 : i32, i32
  }
  func.func @transform_10(%arg0: i32, %arg1: i32) -> (i32, i32, i32) {
    %c0_i32 = arith.constant 0 : i32
    %c0_i32_0 = arith.constant 0 : i32
    return %arg0, %arg1, %c0_i32 : i32, i32, i32
  }
}

</mosaic_0001>

<bundles_post_ra>
// kernel: tpu_custom_call.1
= control target key start
LH: loop header
LB: loop body
LE: loop exit
PB: predicated region body
PF: predicated region fallthrough
CT: control target
= control target key end

     0   :  { %s2315_s0 = inlined_call_operand.hbm [shape: f32[2,8,32], index: 0, kind: input, shape index: {}]   ;;  %s2316_s1 = inlined_call_operand.hbm [shape: bf16[2,8,32], index: 1, kind: input, shape index: {}]   ;;  %s2317_s2 = inlined_call_operand.hbm [shape: bf16[32,32], index: 2, kind: input, shape index: {}]   ;;  %s2318_s3 = inlined_call_operand.vmem [shape: f32[1,32], index: 3, kind: input, shape index: {}]   ;;  %s2319_s4 = inlined_call_operand.hbm [shape: bf16[32,64], index: 4, kind: input, shape index: {}]   ;;  %s2320_s5 = inlined_call_operand.vmem [shape: f32[1,64], index: 5, kind: input, shape index: {}]   ;;  %s2321_s6 = inlined_call_operand.vmem [shape: bf16[32,32], index: 6, kind: input, shape index: {}]   ;;  %s2322_s7 = inlined_call_operand.vmem [shape: f32[1,32], index: 7, kind: input, shape index: {}]   ;;  %s2323_s8 = inlined_call_operand.vmem [shape: f32[1,32], index: 8, kind: input, shape index: {}]   ;;  %s2324_s9 = inlined_call_operand.vmem [shape: f32[1,32], index: 9, kind: input, shape index: {}]   ;;  %s2325_s10 = inlined_call_operand.hbm [shape: f32[2,8,32], index: 10, kind: output, shape index: {}]  }
   0x1   :  { %2334 = sst [smem:[#allocation22_spill]] %s2315_s0 }
   0x2   :  { %2335 = sst [smem:[#allocation23_spill]] %s2317_s2 }
   0x3   :  { %2336 = sst [smem:[#allocation24_spill]] %s2319_s4 }
   0x4   :  { %2337 = sst [smem:[#allocation25_spill]] %s2324_s9 }
   0x5   :  { %2338 = sst [smem:[#allocation26_spill]] %s2325_s10 }
   0x6   :  { %15 = vsyncpa [#allocation6], 0 }
   0x7   :  { %17 = vsyncpa [#allocation6 + $0x1], 0 }
   0x8   :  { %18 = vsyncpa [#allocation9], 0 }
   0x9   :  { %20 = vsyncpa [#allocation9 + $0x1], 0 }
   0xa   :  { %21 = vsyncpa [#allocation12], 0 }
   0xb   :  { %22 = vsyncpa [#allocation7], 0 }
   0xc   :  { %24 = vsyncpa [#allocation7 + $0x1], 0  ;;  %s1911_s13 = smov 0   ;;  %s1913_s14 = smov 0  }
   0xd   :  { %s1915_s15 = smov 0   ;;  %s1917_s16 = smov 0  }
   0xe   :  { %s1919_s17 = smov 0   ;;  %s1921_s18 = smov 0  }
   0xf LB: > { %2339 = sst [smem:[#allocation19_spill]] %s1814_s13  ;;  %s1942_s19 = sadd.s32 4294967295, %s1834_s18   ;;  %s1834_s18 = sphi %s1921_s18, %s30_s18   ;;  %s1830_s17 = sphi %s1919_s17, %s2371_s17   ;;  %s1826_s16 = sphi %s1917_s16, %s2370_s16   ;;  %s1822_s15 = sphi %s1915_s15, %s2369_s15   ;;  %s1818_s14 = sphi %s1913_s14, %s2368_s14   ;;  %s1814_s13 = sphi %s1911_s13, %s2367_s13  }
  0x10   : > { %s1351_s20 = sadd.s32 4294967294, %s1834_s18   ;;  %p64_p0 = scmp.ne.s32.totalorder %s1818_s14, %s1814_s13 }
  0x11   : > { %p2327_p1 = scmp.eq.s32.totalorder %s1942_s19, 0  ;;  %p290_p3 = scmp.eq.s32.totalorder %s1351_s20, 1 }
  0x12   : > { %p1352_p5 = scmp.ge.s32.totalorder %s1834_s18, 1  ;;  %p297_p7 = scmp.lt.s32.totalorder %s1834_s18, 3 }
  0x13   : > { %p1951_p4 = por %p2327_p1, %p64_p0  ;;  %p1956_p6 = por %p290_p3, %p64_p0 }
  0x14   : > { %p1961_p8 = pnand %p1352_p5, %p297_p7  ;;  %s1836_s24 = smov [#allocation10]  }
  0x15   : > { %s2340_s21 = scalar_select %p1951_p4, 1, 0 }
  0x16   : > { %s2341_s22 = scalar_select %p1956_p6, 1, 0 }
  0x17   : > { %s2343_s23 = scalar_select %p1961_p8, 1, 0 }
  0x18   : > { %2342 = sst [smem:[#allocation20_spill]] %s2341_s22  ;;  %s309_s25 = sshll.u32 %s1836_s24, 4  ;;  %s1965_s25 = int_to_ptr.vmem [resolvable:$true] %s309_s25 }
  0x19   : > { %p1511_p9 = pneg %p1961_p8  ;;  %s1837_s27 = smov [#allocation11]  }
  0x1a   : > { %s325_s28 = sshll.u32 %s1837_s27, 4  ;;  %s2345_s2 = sld [smem:[#allocation23_spill]]  ;;  %s1976_s28 = int_to_ptr.vmem [resolvable:$true] %s325_s28 }
  0x1b   : > { %p1972_p11 = pnand %p1511_p9, %p2327_p1 }
  0x1d   : > { %p1626_p13 = pneg %p1972_p11 }
  0x20   : > { %s1624_s11 = scalar_lea.hbm %s2345_s2, 256 }
  0x21   : > { %p1625_p12 = scmp.ne.s32.totalorder %s2345_s2, %s1624_s11  ;;  %p1631_p5 = scmp.lt.u32.totalorder %s1624_s11, %s2345_s2 }
  0x23   : > { %p1627_p0 = pnand %p1626_p13, %p1625_p12 }
  0x25   : > { %p1628_p3 = pneg %p1627_p0 }
  0x27   : > { %p1633_p7 = pnand %p1631_p5, %p1628_p3 }
  0x29   : > { %1636 = shalt.err (!%p1633_p7)
}
  0x2a   : > { %s1637_s27 = scalar_lea.vmem %s1965_s25, 256  ;;  %p1645_p2 = scmp.lt.s32.totalorder %s1965_s25, %s1965_s25 }
  0x2b   : > { %p1638_p9 = scmp.ne.s32.totalorder %s1965_s25, %s1637_s27  ;;  %p1646_p12 = scmp.lt.s32.totalorder %s1637_s27, %s1637_s27 }
  0x2d   : > { %p1640_p10 = pnand %p1638_p9, %p1626_p13  ;;  %p1647_p0 = por %p1646_p12, %p1645_p2 }
  0x2f   : > { %p1641_p1 = pneg %p1640_p10 }
  0x31   : > { %p1648_p6 = pnand %p1647_p0, %p1641_p1 }
  0x33   : > { %1651 = shalt.err (!%p1648_p6)
}
  0x34   : > { %s1838_s22 = smov 64   ;;  %s1839_s29 = smov 4  }
  0x35   : > { %1514 = dma.hbm_to_vmem [thread:$0]  (!%p1972_p11), %s2345_s2, 256, %s1965_s25, [#allocation9], %s1838_s22, %s1838_s22, %s1839_s29  }
  0x36   : > { %s2346_s4 = sld [smem:[#allocation24_spill]] }
  0x3c   : > { %s1652_s24 = scalar_lea.hbm %s2346_s4, 256 }
  0x3d   : > { %p1653_p2 = scmp.ne.s32.totalorder %s2346_s4, %s1652_s24  ;;  %p1659_p10 = scmp.lt.u32.totalorder %s1652_s24, %s2346_s4 }
  0x3f   : > { %p1655_p1 = pnand %p1653_p2, %p1626_p13 }
  0x41   : > { %p1656_p6 = pneg %p1655_p1 }
  0x43   : > { %p1661_p3 = pnand %p1659_p10, %p1656_p6 }
  0x45   : > { %1664 = shalt.err (!%p1661_p3)
}
  0x46   : > { %s1665_s25 = scalar_lea.vmem %s1976_s28, 256  ;;  %p1673_p12 = scmp.lt.s32.totalorder %s1976_s28, %s1976_s28 }
  0x47   : > { %p1666_p5 = scmp.ne.s32.totalorder %s1976_s28, %s1665_s25  ;;  %p1674_p0 = scmp.lt.s32.totalorder %s1665_s25, %s1665_s25 }
  0x49   : > { %p1668_p7 = pnand %p1666_p5, %p1626_p13  ;;  %p1675_p2 = por %p1674_p0, %p1673_p12 }
  0x4b   : > { %p1669_p9 = pneg %p1668_p7 }
  0x4d   : > { %p1676_p1 = pnand %p1675_p2, %p1669_p9 }
  0x4f   : > { %1679 = shalt.err (!%p1676_p1)
}
  0x50   : > { %1517 = dma.hbm_to_vmem [thread:$0]  (!%p1972_p11), %s2346_s4, 256, %s1976_s28, [#allocation12], %s1838_s22, %s1838_s22, %s1839_s29  }
  0x51   : > { %s42_s13 = sadd.s32 1, %s1830_s17  ;;  %s51_s30 = sadd.s32 1, %s1822_s15 }
  0x52   : > { %p44_p13 = scmp.ge.s32.totalorder %s42_s13, 2  ;;  %p58_p6 = scmp.ne.s32.totalorder %s1822_s15, %s1818_s14 }
  0x53   : > { %p59_p10 = scmp.eq.s32.totalorder %s1834_s18, 0  ;;  %p1531_p3 = scmp.lt.s32.totalorder %s1834_s18, 2 }
  0x54   : > { %s2373_s13 = smov (%p44_p13, %s42_s13), 0  ;;  %p2348_p7 = scmp.eq.s32.totalorder %s1942_s19, 1 }
  0x55   : > { %2347 = sst [smem:[#allocation21_spill]] %s2373_s13  ;;  %p60_p5 = por %p59_p10, %p58_p6 }
  0x56   : > { %p2040_p9 = por %p2348_p7, %p58_p6  ;;  %s46_s11 = ssub.s32 %s1830_s17, %s2373_s13 }
  0x57   : > { %s2047_s12 = sand.u32 1, %s1822_s15   ;;  %p49_p11 = scmp.eq.s32.totalorder %s46_s11, 0 }
  0x58   : > { %s2349_s26 = scalar_select %p2040_p9, 1, 0 }
  0x59   : > { %s1356_s28 = sshll.u32 %s2047_s12, 3  ;;  %s1357_s22 = sshll.u32 %s1830_s17, 7 }
  0x5a   : > { %s2052_s29 = scalar_select %p49_p11, %s1822_s15, %s51_s30  }
  0x5b   : > { %s2350_s0 = sld [smem:[#allocation22_spill]]  ;;  %s358_s25 = scalar_lea.vmem [#allocation5], %s1356_s28 }
  0x5c   : > { %s366_s9 = sshll.u32 %s358_s25, 4  ;;  %p2061_p12 = pnand %p1531_p3, %p60_p5  ;;  %s2065_s9 = int_to_ptr.vmem [resolvable:$true] %s366_s9 }
  0x5d   : > { %s355_s11 = scalar_lea.sflag [#allocation6], %s2047_s12 }
  0x5e   : > { %p1682_p2 = pneg %p2061_p12 }
  0x61   : > { %s2057_s27 = scalar_lea.hbm %s2350_s0, %s1357_s22  ;;  %s1685_s24 = scalar_lea.hbm %s2350_s0, 256 }
  0x62   : > { %s1680_s20 = scalar_lea.hbm %s2057_s27, 128  ;;  %p1686_p6 = scmp.lt.u32.totalorder %s2057_s27, %s2350_s0 }
  0x63   : > { %p1681_p0 = scmp.ne.s32.totalorder %s2057_s27, %s1680_s20  ;;  %p1687_p10 = scmp.lt.u32.totalorder %s1685_s24, %s1680_s20 }
  0x64   : > { %p1689_p5 = scmp.lt.u32.totalorder %s1680_s20, %s2057_s27 }
  0x65   : > { %p1683_p1 = pnand %p1682_p2, %p1681_p0  ;;  %p1688_p3 = por %p1687_p10, %p1686_p6 }
  0x67   : > { %p1684_p13 = pneg %p1683_p1  ;;  %p1690_p7 = por %p1689_p5, %p1688_p3 }
  0x69   : > { %p1691_p11 = pnand %p1690_p7, %p1684_p13 }
  0x6b   : > { %1694 = shalt.err (!%p1691_p11)
}
  0x6c   : > { %s1695_s30 = scalar_lea.vmem %s2065_s9, 128  ;;  %s1840_s28 = smov [#allocation5]  }
  0x6d   : > { %p1696_p0 = scmp.ne.s32.totalorder %s2065_s9, %s1695_s30  ;;  %s1700_s22 = sshll.u32 %s1840_s28, 4  ;;  %s1701_s22 = int_to_ptr.vmem [resolvable:$false] %s1700_s22 }
  0x6e   : > { %s1702_s2 = scalar_lea.vmem %s1701_s22, 256  ;;  %p1703_p4 = scmp.lt.s32.totalorder %s2065_s9, %s1701_s22 }
  0x6f   : > { %p1698_p1 = pnand %p1696_p0, %p1682_p2  ;;  %p1704_p6 = scmp.lt.s32.totalorder %s1702_s2, %s1695_s30 }
  0x71   : > { %p1699_p9 = pneg %p1698_p1  ;;  %p1705_p10 = por %p1704_p6, %p1703_p4 }
  0x73   : > { %p1706_p3 = pnand %p1705_p10, %p1699_p9 }
  0x75   : > { %1709 = shalt.err (!%p1706_p3)
}
  0x76   : > { %1521 = dma.hbm_to_vmem [thread:$0]  (!%p2061_p12), %s2057_s27, 128, %s2065_s9, %s355_s11  }
  0x77   : > { %s1358_s20 = sshll.u32 %s2047_s12, 2  ;;  %s1359_s24 = sshll.u32 %s1830_s17, 6 }
  0x78   : > { %s2099_s0 = scalar_lea.hbm %s2316_s1, %s1359_s24  ;;  %s377_s30 = scalar_lea.vmem [#allocation8], %s1358_s20 }
  0x79   : > { %s384_s22 = sshll.u32 %s377_s30, 4  ;;  %s2352_s2 = sand.u32 1, %s1834_s18   ;;  %s385_s22 = int_to_ptr.vmem [resolvable:$true] %s384_s22 }
  0x7a   : > { %s374_s4 = scalar_lea.sflag [#allocation9], %s2352_s2  ;;  %s1710_s13 = scalar_lea.hbm %s2099_s0, 64 }
  0x7b   : > { %p1711_p4 = scmp.ne.s32.totalorder %s2099_s0, %s1710_s13  ;;  %s1715_s9 = scalar_lea.hbm %s2316_s1, 128 }
  0x7c   : > { %p1716_p5 = scmp.lt.u32.totalorder %s2099_s0, %s2316_s1  ;;  %p1717_p7 = scmp.lt.u32.totalorder %s1715_s9, %s1710_s13 }
  0x7d   : > { %p1713_p9 = pnand %p1711_p4, %p1682_p2  ;;  %p1719_p0 = scmp.lt.u32.totalorder %s1710_s13, %s2099_s0 }
  0x7e   : > { %p1718_p11 = por %p1717_p7, %p1716_p5 }
  0x7f   : > { %p1714_p13 = pneg %p1713_p9 }
  0x80   : > { %p1720_p1 = por %p1719_p0, %p1718_p11 }
  0x82   : > { %p1721_p6 = pnand %p1720_p1, %p1714_p13 }
  0x84   : > { %1724 = shalt.err (!%p1721_p6)
}
  0x85   : > { %s1725_s20 = scalar_lea.vmem %s385_s22, 64  ;;  %s1841_s25 = smov [#allocation8]  }
  0x86   : > { %p1726_p10 = scmp.ne.s32.totalorder %s385_s22, %s1725_s20  ;;  %s1730_s28 = sshll.u32 %s1841_s25, 4  ;;  %s1731_s28 = int_to_ptr.vmem [resolvable:$false] %s1730_s28 }
  0x87   : > { %s1732_s30 = scalar_lea.vmem %s1731_s28, 128  ;;  %p1733_p9 = scmp.lt.s32.totalorder %s385_s22, %s1731_s28 }
  0x88   : > { %p1728_p3 = pnand %p1726_p10, %p1682_p2  ;;  %p1734_p8 = scmp.lt.s32.totalorder %s1732_s30, %s1725_s20 }
  0x8a   : > { %p1729_p4 = pneg %p1728_p3  ;;  %p1735_p5 = por %p1734_p8, %p1733_p9 }
  0x8c   : > { %p1736_p7 = pnand %p1735_p5, %p1729_p4 }
  0x8e   : > { %1739 = shalt.err (!%p1736_p7)
}
  0x8f   : > { %1524 = dma.hbm_to_vmem [thread:$0]  (!%p2061_p12), %s2099_s0, 64, %s385_s22, %s374_s4  }
  0x90   : > { %p2353_p13 = scmp.ne.s32.totalorder %s2343_s23, 0 }
  0x91   : > { %s2125_s13 = sand.u32 (!%p2353_p13), 1, %s1818_s14   ;;  %p2354_p8 = scmp.ne.s32.totalorder (!%p2353_p13), %s2340_s21, 0 }
  0x92   : > { %393 = sbr.rel (%p2353_p13) target bundleno = 1948 (0x79c), region = 60  ;;  %s1361_s2 = sshll.u32 (!%p2353_p13), %s2125_s13, 3 }
  0x93   : > { %s396_s12 = scalar_lea.sflag (!%p2353_p13), [#allocation6], %s2125_s13  ;;  %s399_s27 = scalar_lea.vmem (!%p2353_p13), [#allocation5], %s1361_s2 }
  0x99   : > { %1793 = dma.done.wait (%p2354_p8), %s396_s12, 128  }
  0x9a   : > { %1795 = vsyncadd (%p2354_p8), %s396_s12, 4294967168  ;;  %s404_s0 = sand.u32 1, %s1942_s19   ;;  %s1362_s4 = sshll.u32 %s2125_s13, 2 }
  0x9b   : > { %s405_s23 = scalar_lea.sflag [#allocation9], %s404_s0  ;;  %s408_s10 = scalar_lea.vmem [#allocation8], %s1362_s4 }
  0x9c   : > { %1797 = dma.done.wait (%p2354_p8), %s405_s23, 64  }
  0x9d   : > { %1799 = vsyncadd (%p2354_p8), %s405_s23, 4294967232  ;;  %p2355_p12 = scmp.eq.s32.totalorder %s1942_s19, 0 }
  0x9f   : > { %1801 = dma.done.wait (%p2355_p12), [#allocation9], 256   ;;  %p2356_p2 = pmov %p2355_p12 }
  0xa1   : > { %1803 = vsyncadd (%p2356_p2), [#allocation9], 4294967040  ;;  %p2357_p11 = pmov %p2356_p2 }
  0xa2   : > { %p2358_p0 = pmov %p2356_p2 }
  0xa3   : > { %1805 = dma.done.wait (%p2357_p11), [#allocation12], 256  }
  0xa4   : > { %1807 = vsyncadd (%p2358_p0), [#allocation12], 4294967040  ;;  %v1842_v0 = vmov 0.0   ;;  %vm1843_vm0 = vmmov 0   ;;  %v1600_v1 = vld [vmem:[#allocation11] sm:$0xff]   ;;  %v1601_v2 = vld [vmem:[#allocation11 + $0x8] sm:$0xff]   ;;  %v654_v37 = vlaneseq }
  0xa5   : > { %1425 = vmatprep.subr.bf16.mxu0 %v1842_v0  ;;  %1429 = vmatprep.mubr.msk.bf16.mxu0 %vm1843_vm0, %v1842_v0  ;;  %v1602_v3 = vld [vmem:[#allocation10] sm:$0xff]   ;;  %v1603_v4 = vld [vmem:[#allocation10 + $0x8] sm:$0xff]   ;;  %v463_v6 = vld [vmem:[%s408_s10] sm:$0xf]  ;;  %vm487_vm1 = vcmask 261120   ;;  %vm532_vm2 = vcmask 60416  }
  0xa6   : > { %1433 = vmatprep.subr.bf16.mxu1 %v1842_v0  ;;  %1437 = vmatprep.mubr.msk.bf16.mxu1 %vm1843_vm0, %v1842_v0  ;;  %v2156_v5 = vld [vmem:[%s399_s27] sm:$0xff]  ;;  %v1366_v8 = vld [vmem:[%s2320_s5] ss:$0 sm:$0xff]  ;;  %s1844_s11 = smov 104   ;;  %s1845_s24 = smov 120   ;;  %vm662_vm3 = vcmask 64512  }
  0xa7   : > { %1426 = vmatpush3.bf16.msra.mxu0 %v1600_v1  ;;  %1434 = vmatpush3.bf16.msra.mxu1 %v1602_v3  ;;  %v572_v7 = vpack.c.bf16 %v2156_v5, %v2156_v5  ;;  %v1371_v12 = vld [vmem:[%s2318_s3] ss:$0 sm:$0xff]  ;;  %s1846_s20 = smov 112   ;;  %v655_v38 = vshrl.u32 %v654_v37, 7  ;;  %v659_v39 = vand.u32 127, %v654_v37  ;;  %s1848_s25 = smov 96  }
  0xa8   : > { %1427 = vmatprep.subr.bf16.mxu0 %v1842_v0  ;;  %1435 = vmatprep.subr.bf16.mxu1 %v1842_v0  ;;  %v1847_v40 = vmov -1e+09   ;;  %vm902_vm5 = vcmask 1043456   ;;  %s1849_s28 = smov 80   ;;  %s1850_s30 = smov 72   ;;  %vm1094_vm6 = vcmask 126016  }
  0xa9   : > { %vm660_vm4 = vcmp.le.s32.totalorder %v659_v39, %v655_v38  ;;  %s1851_s12 = smov 88   ;;  %s1852_s4 = smov 16   ;;  %vm1103_vm7 = vcmask 191616   ;;  %vm1112_vm8 = vcmask 257216  }
  0xaa   : > { %v661_v41 = vsel %vm660_vm4, 0.0, %v1847_v40  ;;  %s1853_s19 = smov 8   ;;  %s1854_s21 = smov 24  }
  0xab   : > { %1428 = vmatpush3.bf16.msra.mxu0 %v1601_v2  ;;  %1436 = vmatpush3.bf16.msra.mxu1 %v1603_v4  ;;  %s2360_s23 = sld [smem:[#allocation26_spill]]  ;;  %p2361_p6 = scmp.ne.s32.totalorder %s2349_s26, 0 }
  0xac   : > { %1441 = vmatprep.subr.bf16.mxu0 %v1842_v0  ;;  %1447 = vmatprep.subr.bf16.mxu1 %v1842_v0 }
  0xae   : > { %1430 = vmatmul.mubr.msk.bf16.vlgmr.msra.gmra.mrb[0].mxu0 %vm487_vm1, %v463_v6  ;;  %1438 = vmatmul.mubr.msk.bf16.vlgmr.msra.gmra.mrb[0].mxu1 %vm487_vm1, %v572_v7 }
  0xaf   : > { %1443 = vmatprep.mubr.msk.bf16.mxu0 %vm1843_vm0, %v1842_v0  ;;  %1449 = vmatprep.mubr.msk.bf16.mxu1 %vm1843_vm0, %v1842_v0 }
 0x181   : > { %v525_v9 = vpop.f32.mrb[0].mxu0  ;;  %v634_v16 = vpop.f32.mrb[0].mxu1 }
 0x182   : > { %v526_v10 = vadd.f32 %v1366_v8, %v525_v9  ;;  %v1431_v11 = vpop.f32.mrb[1].mxu0  ;;  %v635_v17 = vadd.f32 %v1371_v12, %v634_v16  ;;  %v1439_v18 = vpop.f32.mrb[1].mxu1 }
 0x183   : > { %v528_v13 = vpop.f32.mrb[2].mxu0  ;;  %v637_v19 = vpop.f32.mrb[2].mxu1 }
 0x184   : > { %v2175_v14 = vpack.c.bf16 %v526_v10, %v526_v10  ;;  %v1432_v15 = vpop.f32.mrb[3].mxu0  ;;  %v640_v20 = vmul.f32 0.35355338, %v635_v17  ;;  %v1440_v21 = vpop.f32.mrb[3].mxu1 }
 0x186   : > { %533 = vst.msk [vmem:[#allocation2] sm:$0xf] %vm532_vm2, %v2175_v14  ;;  %561 = vrot.lane.b32.xlu1 %v2175_v14, %s1844_s11  ;;  %541 = vrot.lane.b32.xlu0 %v2175_v14, %s1845_s24  ;;  %v641_v22 = vpack.c.bf16 %v640_v20, %v640_v20 }
 0x18a   : > { %551 = vrot.lane.b32.xlu0 %v2175_v14, %s1846_s20  ;;  %643 = vrot.lane.b32.xlu1 %v641_v22, %s1845_s24 }
 0x18d   : > { %v649_v23 = vld [vmem:[#allocation2] sm:$0xf] }
 0x18e   : > { %v667_v24 = vsel %vm662_vm3, %v649_v23, 0  ;;  %645 = vrot.lane.b32.xlu0 %v641_v22, %s1846_s20  ;;  %647 = vrot.lane.b32.xlu1 %v641_v22, %s1844_s11 }
 0x18f   : > { %1442 = vmatpush3.bf16.xpose.msra.mxu0 %v667_v24 }
 0x190   : > { %1453 = vmatprep.subr.bf16.mxu0 %v1842_v0 }
 0x196   : > { %1444 = vmatmul.mubr.msk.bf16.vlgmr.msra.gmra.mrb[4].mxu0 %vm662_vm3, %v641_v22 }
 0x197   : > { %1455 = vmatprep.mubr.msk.bf16.mxu0 %vm1843_vm0, %v1842_v0 }
 0x1f8   : > { %v562_v25 = vpop.permute.xlu1 %561  ;;  %v542_v26 = vpop.permute.xlu0 %541 }
 0x1f9   : > { %565 = vst.msk [vmem:[#allocation2 + $0xc] sm:$0xf] %vm532_vm2, %v562_v25  ;;  %545 = vst.msk [vmem:[#allocation2 + $0x4] sm:$0xf] %vm532_vm2, %v542_v26 }
 0x1fc   : > { %v552_v27 = vpop.permute.xlu0 %551  ;;  %v644_v33 = vpop.permute.xlu1 %643 }
 0x1fd   : > { %555 = vst.msk [vmem:[#allocation2 + $0x8] sm:$0xf] %vm532_vm2, %v552_v27 }
 0x200   : > { %v650_v28 = vld [vmem:[#allocation2 + $0x4] sm:$0xf]  ;;  %v652_v32 = vld [vmem:[#allocation2 + $0xc] sm:$0xf]  ;;  %v646_v35 = vpop.permute.xlu0 %645  ;;  %v648_v36 = vpop.permute.xlu1 %647 }
 0x201   : > { %v713_v29 = vsel %vm662_vm3, %v650_v28, 0  ;;  %v805_v34 = vsel %vm662_vm3, %v652_v32, 0 }
 0x202   : > { %1448 = vmatpush3.bf16.xpose.msra.mxu1 %v713_v29 }
 0x203   : > { %1459 = vmatprep.subr.bf16.mxu1 %v1842_v0 }
 0x204   : > { %v651_v30 = vld [vmem:[#allocation2 + $0x8] sm:$0xf] }
 0x205   : > { %v759_v31 = vsel %vm662_vm3, %v651_v30, 0 }
 0x206   : > { %1454 = vmatpush3.bf16.xpose.msra.mxu0 %v759_v31 }
 0x207   : > { %1465 = vmatprep.subr.bf16.mxu0 %v1842_v0 }
 0x209   : > { %1450 = vmatmul.mubr.msk.bf16.vlgmr.msra.gmra.mrb[4].mxu1 %vm662_vm3, %v644_v33 }
 0x20a   : > { %1460 = vmatpush3.bf16.xpose.msra.mxu1 %v805_v34  ;;  %1461 = vmatprep.mubr.msk.bf16.mxu1 %vm1843_vm0, %v1842_v0 }
 0x20b   : > { %1471 = vmatprep.subr.bf16.mxu1 %v1842_v0 }
 0x20d   : > { %1456 = vmatmul.mubr.msk.bf16.vlgmr.msra.gmra.mrb[8].mxu0 %vm662_vm3, %v646_v35 }
 0x20e   : > { %1467 = vmatprep.mubr.msk.bf16.mxu0 %vm1843_vm0, %v1842_v0 }
 0x211   : > { %1462 = vmatmul.mubr.msk.bf16.vlgmr.msra.gmra.mrb[8].mxu1 %vm662_vm3, %v648_v36 }
 0x212   : > { %1473 = vmatprep.mubr.msk.bf16.mxu1 %vm1843_vm0, %v1842_v0 }
 0x269   : > { %v703_v42 = vpop.f32.mrb[4].mxu0 }
 0x26a   : > { %v704_v43 = vadd.f32 %v703_v42, %v661_v41  ;;  %v1445_v44 = vpop.f32.mrb[5].mxu0 }
 0x26b   : > { %v706_v45 = vpop.f32.mrb[6].mxu0 }
 0x26c   : > { %v1446_v46 = vpop.f32.mrb[7].mxu0  ;;  %v847_v47 = vsel %vm662_vm3, %v704_v43, -inf }
 0x26d   : > { %848 = vmax.xlane.f32.xlu0 %v847_v47 }
 0x2dc   : > { %v749_v48 = vpop.f32.mrb[4].mxu1 }
 0x2dd   : > { %v750_v49 = vadd.f32 %v749_v48, %v661_v41  ;;  %v1451_v50 = vpop.f32.mrb[5].mxu1 }
 0x2de   : > { %v752_v51 = vpop.f32.mrb[6].mxu1 }
 0x2df   : > { %v1452_v52 = vpop.f32.mrb[7].mxu1  ;;  %v850_v53 = vsel %vm662_vm3, %v750_v49, -inf }
 0x2e0   : > { %851 = vmax.xlane.f32.xlu1 %v850_v53  ;;  %v795_v54 = vpop.f32.mrb[8].mxu0 }
 0x2e1   : > { %v796_v55 = vadd.f32 %v795_v54, %v661_v41  ;;  %v1457_v56 = vpop.f32.mrb[9].mxu0 }
 0x2e2   : > { %v798_v57 = vpop.f32.mrb[10].mxu0 }
 0x2e3   : > { %v1458_v58 = vpop.f32.mrb[11].mxu0  ;;  %v853_v59 = vsel %vm662_vm3, %v796_v55, -inf }
 0x2e4   : > { %v841_v60 = vpop.f32.mrb[8].mxu1  ;;  %854 = vmax.xlane.f32.xlu0 %v853_v59 }
 0x2e5   : > { %v842_v61 = vadd.f32 %v841_v60, %v661_v41  ;;  %v1463_v62 = vpop.f32.mrb[9].mxu1  ;;  %v1604_v60 = vld [vmem:[%s2321_s6] sm:$0xff]  }
 0x2e6   : > { %v844_v63 = vpop.f32.mrb[10].mxu1 }
 0x2e7   : > { %v1464_v1 = vpop.f32.mrb[11].mxu1  ;;  %v856_v2 = vsel %vm662_vm3, %v842_v61, -inf  ;;  %v1605_v63 = vld [vmem:[%s2321_s6 + $0x8] sm:$0xff]  }
 0x2e8   : > { %857 = vmax.xlane.f32.xlu0 %v856_v2 }
 0x2f1   : > { %537 = vrot.lane.b32.xlu1 %v2175_v14, %s1848_s25 }
 0x2fa   : > { %v849_v3 = vpop.xlane.xlu0 %848 }
 0x2fb   : > { %v859_v4 = vsub.f32 %v704_v43, %v849_v3 }
 0x2fd   : > { %v863_v6 = vmul.f32 1.442695, %v859_v4 }
 0x2ff   : > { %1606 = vpow2.f32 %v863_v6 }
 0x309   : > { %v1607_v7 = vpop.eup %1606 }
 0x30a   : > { %v871_v8 = vsel %vm662_vm3, %v1607_v7, 0.0 }
 0x315   : > { %872 = vadd.xlane.f32.xlu1 %v871_v8 }
 0x36d   : > { %v852_v9 = vpop.xlane.xlu1 %851 }
 0x36e   : > { %v860_v10 = vsub.f32 %v750_v49, %v852_v9 }
 0x370   : > { %v865_v11 = vmul.f32 1.442695, %v860_v10 }
 0x371   : > { %v538_v12 = vpop.permute.xlu1 %537  ;;  %v855_v13 = vpop.xlane.xlu0 %854 }
 0x372   : > { %1608 = vpow2.f32 %v865_v11  ;;  %540 = vst.msk [vmem:[#allocation3] sm:$0xf] %vm532_vm2, %v538_v12  ;;  %v861_v15 = vsub.f32 %v796_v55, %v855_v13 }
 0x374   : > { %v867_v16 = vmul.f32 1.442695, %v861_v15 }
 0x375   : > { %v858_v17 = vpop.xlane.xlu0 %857 }
 0x376   : > { %1610 = vpow2.f32 %v867_v16  ;;  %v862_v18 = vsub.f32 %v842_v61, %v858_v17  ;;  %v1386_v16 = vld [vmem:[%s2322_s7] ss:$0 sm:$0xff] }
 0x378   : > { %v869_v19 = vmul.f32 1.442695, %v862_v18 }
 0x379   : > { %v895_v20 = vld [vmem:[#allocation3] sm:$0xf] }
 0x37a   : > { %1612 = vpow2.f32 %v869_v19  ;;  %v904_v21 = vsel %vm902_vm5, %v895_v20, 0 }
 0x37b   : > { %1466 = vmatpush3.bf16.msra.mxu0 %v904_v21 }
 0x37c   : > { %v1609_v22 = vpop.eup %1608  ;;  %1477 = vmatprep.subr.bf16.mxu0 %v1842_v0 }
 0x37d   : > { %v874_v23 = vsel %vm662_vm3, %v1609_v22, 0.0 }
 0x37e   : > { %875 = vadd.xlane.f32.xlu0 %v874_v23 }
 0x380   : > { %v1611_v24 = vpop.eup %1610 }
 0x381   : > { %v877_v25 = vsel %vm662_vm3, %v1611_v24, 0.0 }
 0x382   : > { %878 = vadd.xlane.f32.xlu1 %v877_v25 }
 0x384   : > { %v1613_v26 = vpop.eup %1612 }
 0x385   : > { %v880_v27 = vsel %vm662_vm3, %v1613_v26, 0.0 }
 0x386   : > { %881 = vadd.xlane.f32.xlu0 %v880_v27 }
 0x393   : > { %556 = vrot.lane.b32.xlu1 %v2175_v14, %s1849_s28  ;;  %s2359_s28 = sld [smem:[#allocation25_spill]] }
 0x397   : > { %566 = vrot.lane.b32.xlu1 %v2175_v14, %s1850_s30  ;;  %s1393_s30 = sshll.u32 %s1826_s16, 7  ;;  %s1855_s16 = smov [#allocation13]  }
 0x398   : > { %s2265_s10 = scalar_lea.hbm %s2360_s23, %s1393_s30 }
 0x39c   : > { %546 = vrot.lane.b32.xlu0 %v2175_v14, %s1851_s12  ;;  %s457_s12 = scalar_lea.vmem [#allocation13], %s1361_s2  ;;  %s1744_s2 = sshll.u32 %s1855_s16, 4  ;;  %s1745_s2 = int_to_ptr.vmem [resolvable:$false] %s1744_s2 }
 0x39d   : > { %s1228_s27 = sshll.u32 %s457_s12, 4  ;;  %s1746_s22 = scalar_lea.vmem %s1745_s2, 256  ;;  %s2267_s27 = int_to_ptr.vmem [resolvable:$true] %s1228_s27 }
 0x39e   : > { %p1747_p4 = scmp.lt.s32.totalorder %s2267_s27, %s1745_s2 }
 0x3a2   : > { %v873_v28 = vpop.xlane.xlu1 %872 }
 0x3a3   : > { %1614 = vrcp.f32 %v873_v28 }
 0x3ad   : > { %v1615_v29 = vpop.eup %1614 }
 0x3ae   : > { %v884_v30 = vmul.f32 %v1615_v29, %v1607_v7 }
 0x3b0   : > { %v891_v31 = vpack.c.bf16 %v884_v30, %v884_v30 }
 0x3b2   : > { %1468 = vmatmul.mubr.msk.bf16.vlgmr.msra.gmra.mrb[12].mxu0 %vm662_vm3, %v891_v31 }
 0x3b3   : > { %1479 = vmatprep.mubr.msk.bf16.mxu0 %vm1843_vm0, %v1842_v0 }
 0x40b   : > { %v876_v32 = vpop.xlane.xlu0 %875 }
 0x40f   : > { %v879_v33 = vpop.xlane.xlu1 %878 }
 0x410   : > { %1616 = vrcp.f32 %v879_v33 }
 0x411   : > { %1618 = vrcp.f32 %v876_v32 }
 0x413   : > { %v557_v34 = vpop.permute.xlu1 %556  ;;  %v882_v35 = vpop.xlane.xlu0 %881 }
 0x414   : > { %560 = vst.msk [vmem:[#allocation3 + $0x8] sm:$0xf] %vm532_vm2, %v557_v34  ;;  %1620 = vrcp.f32 %v882_v35  ;;  %v1391_v34 = vld [vmem:[%s2359_s28] ss:$0 sm:$0xff] }
 0x417   : > { %v567_v36 = vpop.permute.xlu1 %566  ;;  %v547_v14 = vpop.permute.xlu0 %546 }
 0x418   : > { %570 = vst.msk [vmem:[#allocation3 + $0xc] sm:$0xf] %vm532_vm2, %v567_v36  ;;  %550 = vst.msk [vmem:[#allocation3 + $0x4] sm:$0xf] %vm532_vm2, %v547_v14 }
 0x41a   : > { %v1617_v37 = vpop.eup %1616 }
 0x41b   : > { %v1619_v38 = vpop.eup %1618  ;;  %v888_v39 = vmul.f32 %v1617_v37, %v1611_v24  ;;  %v897_v40 = vld [vmem:[#allocation3 + $0x8] sm:$0xf] }
 0x41c   : > { %v996_v41 = vsel %vm902_vm5, %v897_v40, 0  ;;  %v886_v43 = vmul.f32 %v1619_v38, %v1609_v22 }
 0x41d   : > { %1478 = vmatpush3.bf16.msra.mxu0 %v996_v41  ;;  %v893_v42 = vpack.c.bf16 %v888_v39, %v888_v39 }
 0x41e   : > { %1489 = vmatprep.subr.bf16.mxu0 %v1842_v0  ;;  %v892_v47 = vpack.c.bf16 %v886_v43, %v886_v43  ;;  %v1621_v48 = vpop.eup %1620 }
 0x41f   : > { %v896_v44 = vld [vmem:[#allocation3 + $0x4] sm:$0xf]  ;;  %v898_v46 = vld [vmem:[#allocation3 + $0xc] sm:$0xf]  ;;  %v890_v50 = vmul.f32 %v1621_v48, %v1613_v26 }
 0x420   : > { %1480 = vmatmul.mubr.msk.bf16.vlgmr.msra.gmra.mrb[16].mxu0 %vm662_vm3, %v893_v42  ;;  %v950_v45 = vsel %vm902_vm5, %v896_v44, 0  ;;  %v1042_v49 = vsel %vm902_vm5, %v898_v46, 0 }
 0x421   : > { %1472 = vmatpush3.bf16.msra.mxu1 %v950_v45  ;;  %1493 = vmatprep.mubr.msk.bf16.mxu0 %vm1843_vm0, %v1842_v0  ;;  %v894_v51 = vpack.c.bf16 %v890_v50, %v890_v50 }
 0x422   : > { %1483 = vmatprep.subr.bf16.mxu1 %v1842_v0  ;;  %1490 = vmatpush3.bf16.msra.mxu0 %v1604_v60 }
 0x423   : > { %1491 = vmatprep.subr.bf16.mxu0 %v1842_v0 }
 0x424   : > { %1474 = vmatmul.mubr.msk.bf16.vlgmr.msra.gmra.mrb[12].mxu1 %vm662_vm3, %v892_v47 }
 0x425   : > { %1484 = vmatpush3.bf16.msra.mxu1 %v1042_v49  ;;  %1485 = vmatprep.mubr.msk.bf16.mxu1 %vm1843_vm0, %v1842_v0 }
 0x426   : > { %1492 = vmatpush3.bf16.msra.mxu0 %v1605_v63 }
 0x42c   : > { %1486 = vmatmul.mubr.msk.bf16.vlgmr.msra.gmra.mrb[16].mxu1 %vm662_vm3, %v894_v51 }
 0x485   : > { %v940_v52 = vpop.f32.mrb[12].mxu0 }
 0x486   : > { %v1084_v53 = vpack.c.bf16 %v940_v52, %v940_v52  ;;  %v1469_v54 = vpop.f32.mrb[13].mxu0 }
 0x487   : > { %v943_v55 = vpop.f32.mrb[14].mxu0 }
 0x488   : > { %1086 = vst.msk [vmem:[#allocation4] sm:$0xf] %vm532_vm2, %v1084_v53  ;;  %v1470_v56 = vpop.f32.mrb[15].mxu0 }
 0x4f3   : > { %v1032_v57 = vpop.f32.mrb[16].mxu0 }
 0x4f4   : > { %v1398_v58 = vpack.c.bf16 %v1032_v57, %v1032_v57  ;;  %v1481_v59 = vpop.f32.mrb[17].mxu0 }
 0x4f5   : > { %v1035_v61 = vpop.f32.mrb[18].mxu0 }
 0x4f6   : > { %1100 = vrot.lane.b32.xlu1 %v1398_v58, %s1852_s4  ;;  %v1482_v62 = vpop.f32.mrb[19].mxu0 }
 0x4f7   : > { %v986_v1 = vpop.f32.mrb[12].mxu1 }
 0x4f8   : > { %v1397_v2 = vpack.c.bf16 %v986_v1, %v986_v1  ;;  %v1475_v3 = vpop.f32.mrb[13].mxu1 }
 0x4f9   : > { %v989_v4 = vpop.f32.mrb[14].mxu1 }
 0x4fa   : > { %1091 = vrot.lane.b32.xlu0 %v1397_v2, %s1853_s19  ;;  %v1476_v6 = vpop.f32.mrb[15].mxu1  ;;  %s1214_s19 = scalar_lea.sflag [#allocation7], %s2125_s13 }
 0x4ff   : > { %v1078_v7 = vpop.f32.mrb[16].mxu1 }
 0x500   : > { %v1399_v8 = vpack.c.bf16 %v1078_v7, %v1078_v7  ;;  %v1487_v9 = vpop.f32.mrb[17].mxu1 }
 0x501   : > { %v1081_v10 = vpop.f32.mrb[18].mxu1 }
 0x502   : > { %1109 = vrot.lane.b32.xlu0 %v1399_v8, %s1854_s21  ;;  %v1488_v11 = vpop.f32.mrb[19].mxu1  ;;  %s1740_s21 = scalar_lea.vmem %s2267_s27, 128 }
 0x503   : > { %p1741_p1 = scmp.ne.s32.totalorder %s2267_s27, %s1740_s21  ;;  %p1748_p9 = scmp.lt.s32.totalorder %s1746_s22, %s1740_s21 }
 0x505   : > { %p1742_p10 = pnand %p1741_p1, %p2361_p6  ;;  %p1749_p5 = por %p1748_p9, %p1747_p4 }
 0x507   : > { %p1743_p3 = pneg %p1742_p10 }
 0x509   : > { %p1750_p7 = pnand %p1749_p5, %p1743_p3 }
 0x568   : > { %v1101_v13 = vpop.permute.xlu1 %1100 }
 0x56c   : > { %v1092_v12 = vpop.permute.xlu0 %1091 }
 0x56d   : > { %1095 = vst.msk [vmem:[#allocation4] sm:$0xf] %vm1094_vm6, %v1092_v12 }
 0x56e   : > { %1104 = vst.msk [vmem:[#allocation4] sm:$0xf] %vm1103_vm7, %v1101_v13 }
 0x574   : > { %v1110_v0 = vpop.permute.xlu0 %1109 }
 0x575   : > { %1113 = vst.msk [vmem:[#allocation4] sm:$0xf] %vm1112_vm8, %v1110_v0 }
 0x57c   : > { %v1114_v15 = vld [vmem:[#allocation4] sm:$0xf] }
 0x57d   : > { %1494 = vmatmul.mubr.msk.bf16.vlgmr.msra.gmra.mrb[20].mxu0 %vm487_vm1, %v1114_v15 }
 0x650   : > { %v1175_v17 = vpop.f32.mrb[20].mxu0 }
 0x651   : > { %v1176_v18 = vadd.f32 %v1386_v16, %v1175_v17  ;;  %v1495_v19 = vpop.f32.mrb[21].mxu0 }
 0x652   : > { %v1178_v20 = vpop.f32.mrb[22].mxu0 }
 0x653   : > { %v1496_v21 = vpop.f32.mrb[23].mxu0  ;;  %v1181_v22 = vadd.f32 %v1176_v18, %v2156_v5  ;;  %v1390_v5 = vld [vmem:[%s2323_s8] ss:$0 sm:$0xff] }
 0x655   : > { %v1182_v23 = vsel %vm487_vm1, %v1181_v22, 0.0 }
 0x656   : > { %1183 = vadd.xlane.f32.xlu1 %v1182_v23 }
 0x6e3   : > { %v1184_v24 = vpop.xlane.xlu1 %1183 }
 0x6e4   : > { %v1186_v25 = vmul.f32 0.03125, %v1184_v24 }
 0x6e6   : > { %v1187_v26 = vsub.f32 %v1181_v22, %v1186_v25 }
 0x6e8   : > { %v1188_v27 = vmul.f32 %v1187_v26, %v1187_v26 }
 0x6ea   : > { %v1189_v28 = vsel %vm487_vm1, %v1188_v27, 0.0 }
 0x6eb   : > { %1190 = vadd.xlane.f32.xlu0 %v1189_v28 }
 0x778   : > { %v1191_v29 = vpop.xlane.xlu0 %1190 }
 0x779   : > { %v1192_v30 = vmul.f32 0.03125, %v1191_v29 }
 0x77b   : > { %v1193_v31 = vadd.f32 1e-05, %v1192_v30 }
 0x77d   : > { %1622 = vrsqrt.f32 %v1193_v31 }
 0x787   : > { %v1623_v32 = vpop.eup %1622 }
 0x788   : > { %v1195_v33 = vmul.f32 %v1623_v32, %v1187_v26 }
 0x78a   : > { %v1203_v35 = vmul.f32 %v1390_v5, %v1195_v33 }
 0x78c   : > { %v1211_v36 = vadd.f32 %v1391_v34, %v1203_v35 }
 0x78e   : > { %1212 = vst.msk [vmem:[%s457_s12] sm:$0xff] %vm487_vm1, %v1211_v36 }
 0x78f   : > { %1753 = shalt.err (!%p1750_p7)
}
 0x790   : > { %s1754_s13 = scalar_lea.hbm %s2265_s10, 128  ;;  %s1758_s24 = scalar_lea.hbm %s2360_s23, 256 }
 0x791   : > { %p1755_p13 = scmp.ne.s32.totalorder %s2265_s10, %s1754_s13  ;;  %p1759_p2 = scmp.lt.u32.totalorder %s2265_s10, %s2360_s23 }
 0x792   : > { %p1760_p11 = scmp.lt.u32.totalorder %s1758_s24, %s1754_s13  ;;  %p1762_p1 = scmp.lt.u32.totalorder %s1754_s13, %s2265_s10 }
 0x793   : > { %p1756_p8 = pnand %p1755_p13, %p2361_p6 }
 0x794   : > { %p1761_p0 = por %p1760_p11, %p1759_p2 }
 0x795   : > { %p1757_p12 = pneg %p1756_p8 }
 0x796   : > { %p1763_p10 = por %p1762_p1, %p1761_p0 }
 0x798   : > { %p1764_p3 = pnand %p1763_p10, %p1757_p12 }
 0x79a   : > { %1767 = shalt.err (!%p1764_p3)
}
 0x79b   : > { %1509 = dma.vmem_to_hbm [thread:$0]  (%p2361_p6), %s2267_s27, 128, %s2265_s10, %s1214_s19  }
 0x79c PF: > { %s2362_s28 = sld [smem:[#allocation19_spill]]  ;;  %s2363_s30 = sld [smem:[#allocation20_spill]] }
 0x79d   : > { %p2365_p9 = scmp.ge.s32.totalorder %s1834_s18, 2 }
 0x7a2   : > { %s1240_s12 = sand.u32 1, %s2362_s28   ;;  %p2364_p4 = scmp.ne.s32.totalorder %s2363_s30, 0 }
 0x7a3   : > { %s1241_s0 = scalar_lea.sflag [#allocation7], %s1240_s12 }
 0x7a4   : > { %p1526_p5 = pnand %p2365_p9, %p2364_p4 }
 0x7a6   : > { %1809 = dma.done.wait (!%p1526_p5), %s1241_s0, 128  }
 0x7a7   : > { %1811 = vsyncadd (!%p1526_p5), %s1241_s0, 4294967168  ;;  %s30_s18 = sadd.s32 1, %s1834_s18   ;;  %s2366_s26 = sld [smem:[#allocation21_spill]] }
 0x7a8   : > { %p27_p7 = scmp.ge.s32.totalorder %s30_s18, 4   ;;  %s2367_s13 = smov %s1818_s14 }
 0x7a9   : > { %s2368_s14 = smov %s1822_s15  ;;  %s2369_s15 = smov %s2052_s29 }
 0x7aa   : > { %s2370_s16 = smov %s1830_s17  ;;  %29 = sbr.rel (!%p27_p7) target bundleno = 15 (0xf), region = 136 }
 0x7ad   : > { %s2371_s17 = smov %s2366_s26 }
 0x7b1   :  { %1246 = vsyncpa [#allocation6], 1 }
 0x7b2   :  { %1248 = vsyncpa [#allocation6 + $0x1], 1 }
 0x7b3   :  { %1249 = vsyncpa [#allocation9], 1 }
 0x7b4   :  { %1251 = vsyncpa [#allocation9 + $0x1], 1 }
 0x7b5   :  { %1252 = vsyncpa [#allocation12], 1 }
 0x7b6   :  { %1253 = vsyncpa [#allocation7], 1 }
 0x7b7   :  { %1255 = vsyncpa [#allocation7 + $0x1], 1 }

</bundles_post_ra>
